<compile_context>
chip_gen: v7x
topology: tpu7x:2x2x1
jax: 0.10.0
libtpu: 0.0.40
codegen_flags: <defaults>
</compile_context>

<pallas_src>
import jax
import jax.numpy as jnp
from jax.experimental import pallas as pl
from jax.experimental.pallas import tpu as pltpu

C_IN = 192
C_OUT = 48
H = W = 7
HW = H * W
KH = KW = 3
NTAPS = KH * KW

_FLOPS = 2 * (NTAPS * C_OUT) * C_IN * HW               # one 432x192x49 matmul
_BYTES = (C_IN * HW * 4                                # x (f32)
          + NTAPS * C_OUT * C_IN * 2                   # stacked weights (bf16)
          + NTAPS * C_OUT * HW * 4                     # pre-broadcast masks (f32)
          + C_OUT * HW * 4)                            # output (f32)


def relu_conv_kernel(x_ref, w_ref, m_ref, o_ref):
    # x_ref: [C_IN, HW]          raw flattened NCHW input (ReLU fused in-kernel)
    # w_ref: [NTAPS*C_OUT, C_IN] per-tap stacked weights, bf16 (precomputed)
    # m_ref: [NTAPS*C_OUT, HW]   pre-shifted, pre-broadcast border masks, f32
    # o_ref: [C_OUT, HW]         output; reshapes bitcast-free to NCHW
    xr = jnp.maximum(x_ref[...], 0.0).astype(jnp.bfloat16)   # fused ReLU + bf16 cast
    # One MXU matmul covering all 9 taps: M=432, K=192, N=49 (bf16 in, f32 acc).
    y = jnp.dot(w_ref[...], xr, preferred_element_type=jnp.float32)
    # Single full-width mask multiply (masks were rolled by +s per tap at init,
    # so masking-before-shift == masking-after-shift).
    y = y * m_ref[...]

    # Per-tap lane shifts (logical roll over the 49-wide axis), then tree-add.
    taps = []
    for tap in range(NTAPS):
        kh, kw = tap // KW, tap % KW
        s = (kh - 1) * W + (kw - 1)                    # shift in flattened HW
        yt = y[tap * C_OUT:(tap + 1) * C_OUT, :]       # sublane-aligned slice
        if s != 0:
            yt = jnp.roll(yt, -s, axis=1)              # static lane shift
        taps.append(yt)
    # Pairwise tree reduction (depth 4 instead of an 8-deep serial chain).
    while len(taps) > 1:
        nxt = [taps[i] + taps[i + 1] for i in range(0, len(taps) - 1, 2)]
        if len(taps) % 2:
            nxt.append(taps[-1])
        taps = nxt
    o_ref[...] = taps[0].astype(o_ref.dtype)           # single store


def init_params(w_oihw):
    """One-time weight / mask layout, hoisted out of the per-call path."""
    # [C_OUT, C_IN, KH, KW] -> [KH, KW, C_OUT, C_IN] -> [NTAPS*C_OUT, C_IN], bf16.
    w_stack = (jnp.transpose(w_oihw, (2, 3, 0, 1))
               .reshape(NTAPS * C_OUT, C_IN)
               .astype(jnp.bfloat16))
    # Pre-shifted, pre-broadcast conv-border masks: [NTAPS*C_OUT, HW].
    hh = jnp.arange(H)[:, None]
    ww = jnp.arange(W)[None, :]
    rows = []
    for kh in range(KH):
        for kw in range(KW):
            dh, dw = kh - 1, kw - 1
            valid_out = ((hh + dh >= 0) & (hh + dh < H) &
                         (ww + dw >= 0) & (ww + dw < W)).reshape(HW)
            s = dh * W + dw
            valid_in = jnp.roll(valid_out, s)          # mask_in[q] = mask_out[q - s]
            rows.append(jnp.broadcast_to(valid_in, (C_OUT, HW)))
    m_full = jnp.concatenate(rows, axis=0).astype(jnp.float32)
    return w_stack, m_full


@jax.jit
def relu_conv2d(x_nchw, w_stack, m_full):
    """x_nchw: [1, C_IN, H, W] -> [1, C_OUT, H, W] (ReLU then 3x3 conv, pad=1)."""
    x2d = x_nchw.reshape(C_IN, HW)                     # free row-major reshape
    out = pl.pallas_call(
        relu_conv_kernel,
        out_shape=jax.ShapeDtypeStruct((C_OUT, HW), x_nchw.dtype),
        in_specs=[pl.BlockSpec(memory_space=pltpu.VMEM),
                  pl.BlockSpec(memory_space=pltpu.VMEM),
                  pl.BlockSpec(memory_space=pltpu.VMEM)],
        out_specs=pl.BlockSpec(memory_space=pltpu.VMEM),
        cost_estimate=pl.CostEstimate(flops=_FLOPS, transcendentals=0,
                                      bytes_accessed=_BYTES),
    )(x2d, w_stack, m_full)
    return out.reshape(1, C_OUT, H, W)                 # free row-major reshape


if __name__ == "__main__":
    key = jax.random.PRNGKey(0)
    kx, kw_key = jax.random.split(key)

    # Deterministic synthetic input & weights (shapes from the module's __init__).
    x = jax.random.normal(kx, (1, C_IN, H, W), dtype=jnp.float32)
    fan_in = C_IN * KH * KW
    bound = (1.0 / fan_in) ** 0.5
    w = jax.random.uniform(kw_key, (C_OUT, C_IN, KH, KW),
                           minval=-bound, maxval=bound, dtype=jnp.float32)

    w_stack, m_full = init_params(w)   # one-time init, outside the per-call path
    y = relu_conv2d(x, w_stack, m_full)
    jax.block_until_ready(y)

    # Reference: ReLU then conv via XLA, to validate the Pallas kernel.
    x_relu = jnp.maximum(x, 0.0)
    y_ref = jax.lax.conv_general_dilated(
        x_relu, w, window_strides=(1, 1), padding=((1, 1), (1, 1)),
        dimension_numbers=("NCHW", "OIHW", "NCHW"))
    assert y.shape == (1, C_OUT, H, W)
    max_err = float(jnp.max(jnp.abs(y - y_ref)))
    # bf16 MXU operands (f32 accumulate) -> tolerance loosened vs. the f32 ref.
    assert jnp.allclose(y, y_ref, atol=2e-2, rtol=2e-2), max_err

    print("KERNEL_OK")
</pallas_src>

<mosaic_0001>
module attributes {stable_mosaic.version = 11 : i64} {
  func.func @relu_conv_kernel(%arg0: memref<192x49xf32, #tpu.memory_space<vmem>>, %arg1: memref<432x192xbf16, #tpu.memory_space<vmem>>, %arg2: memref<432x49xf32, #tpu.memory_space<vmem>>, %arg3: memref<48x49xf32, #tpu.memory_space<vmem>>) attributes {dimension_semantics = [], scalar_prefetch = 0 : i64, scratch_operands = 0 : i64, tpu.core_type = #tpu.core_type<tc>} {
    %c0 = arith.constant 0 : index
    %c0_0 = arith.constant 0 : index
    %0 = vector.load %arg0[%c0, %c0_0] : memref<192x49xf32, #tpu.memory_space<vmem>>, vector<192x49xf32>
    %cst = arith.constant 0.000000e+00 : f32
    %1 = vector.broadcast %cst : f32 to vector<192x49xf32>
    %2 = arith.maximumf %0, %1 : vector<192x49xf32>
    %3 = arith.truncf %2 : vector<192x49xf32> to vector<192x49xbf16>
    %c0_1 = arith.constant 0 : index
    %c0_2 = arith.constant 0 : index
    %4 = vector.load %arg1[%c0_1, %c0_2] : memref<432x192xbf16, #tpu.memory_space<vmem>>, vector<432x192xbf16>
    %cst_3 = arith.constant dense<0.000000e+00> : vector<432x49xf32>
    %5 = tpu.matmul %4, %3, %cst_3 {dimension_numbers = #tpu.dot_dimension_numbers<[1], [0], [0], [1], [0, 0, 1, 1], [], []>} : vector<432x192xbf16>, vector<192x49xbf16>, vector<432x49xf32> -> vector<432x49xf32>
    %c0_4 = arith.constant 0 : index
    %c0_5 = arith.constant 0 : index
    %6 = vector.load %arg2[%c0_4, %c0_5] : memref<432x49xf32, #tpu.memory_space<vmem>>, vector<432x49xf32>
    %7 = arith.mulf %5, %6 : vector<432x49xf32>
    %8 = vector.extract_strided_slice %7 {offsets = [0, 0], sizes = [48, 49], strides = [1, 1]} : vector<432x49xf32> to vector<48x49xf32>
    %9 = vector.extract_strided_slice %8 {offsets = [0, 41], sizes = [48, 8], strides = [1, 1]} : vector<48x49xf32> to vector<48x8xf32>
    %10 = vector.extract_strided_slice %8 {offsets = [0, 0], sizes = [48, 41], strides = [1, 1]} : vector<48x49xf32> to vector<48x41xf32>
    %11 = tpu.concatenate %9, %10 in 1 : vector<48x8xf32>, vector<48x41xf32> -> vector<48x49xf32>
    %12 = vector.extract_strided_slice %7 {offsets = [48, 0], sizes = [48, 49], strides = [1, 1]} : vector<432x49xf32> to vector<48x49xf32>
    %13 = vector.extract_strided_slice %12 {offsets = [0, 42], sizes = [48, 7], strides = [1, 1]} : vector<48x49xf32> to vector<48x7xf32>
    %14 = vector.extract_strided_slice %12 {offsets = [0, 0], sizes = [48, 42], strides = [1, 1]} : vector<48x49xf32> to vector<48x42xf32>
    %15 = tpu.concatenate %13, %14 in 1 : vector<48x7xf32>, vector<48x42xf32> -> vector<48x49xf32>
    %16 = vector.extract_strided_slice %7 {offsets = [96, 0], sizes = [48, 49], strides = [1, 1]} : vector<432x49xf32> to vector<48x49xf32>
    %17 = vector.extract_strided_slice %16 {offsets = [0, 43], sizes = [48, 6], strides = [1, 1]} : vector<48x49xf32> to vector<48x6xf32>
    %18 = vector.extract_strided_slice %16 {offsets = [0, 0], sizes = [48, 43], strides = [1, 1]} : vector<48x49xf32> to vector<48x43xf32>
    %19 = tpu.concatenate %17, %18 in 1 : vector<48x6xf32>, vector<48x43xf32> -> vector<48x49xf32>
    %20 = vector.extract_strided_slice %7 {offsets = [144, 0], sizes = [48, 49], strides = [1, 1]} : vector<432x49xf32> to vector<48x49xf32>
    %21 = vector.extract_strided_slice %20 {offsets = [0, 48], sizes = [48, 1], strides = [1, 1]} : vector<48x49xf32> to vector<48x1xf32>
    %22 = vector.extract_strided_slice %20 {offsets = [0, 0], sizes = [48, 48], strides = [1, 1]} : vector<48x49xf32> to vector<48x48xf32>
    %23 = tpu.concatenate %21, %22 in 1 : vector<48x1xf32>, vector<48x48xf32> -> vector<48x49xf32>
    %24 = vector.extract_strided_slice %7 {offsets = [192, 0], sizes = [48, 49], strides = [1, 1]} : vector<432x49xf32> to vector<48x49xf32>
    %25 = vector.extract_strided_slice %7 {offsets = [240, 0], sizes = [48, 49], strides = [1, 1]} : vector<432x49xf32> to vector<48x49xf32>
    %26 = vector.extract_strided_slice %25 {offsets = [0, 1], sizes = [48, 48], strides = [1, 1]} : vector<48x49xf32> to vector<48x48xf32>
    %27 = vector.extract_strided_slice %25 {offsets = [0, 0], sizes = [48, 1], strides = [1, 1]} : vector<48x49xf32> to vector<48x1xf32>
    %28 = tpu.concatenate %26, %27 in 1 : vector<48x48xf32>, vector<48x1xf32> -> vector<48x49xf32>
    %29 = vector.extract_strided_slice %7 {offsets = [288, 0], sizes = [48, 49], strides = [1, 1]} : vector<432x49xf32> to vector<48x49xf32>
    %30 = vector.extract_strided_slice %29 {offsets = [0, 6], sizes = [48, 43], strides = [1, 1]} : vector<48x49xf32> to vector<48x43xf32>
    %31 = vector.extract_strided_slice %29 {offsets = [0, 0], sizes = [48, 6], strides = [1, 1]} : vector<48x49xf32> to vector<48x6xf32>
    %32 = tpu.concatenate %30, %31 in 1 : vector<48x43xf32>, vector<48x6xf32> -> vector<48x49xf32>
    %33 = vector.extract_strided_slice %7 {offsets = [336, 0], sizes = [48, 49], strides = [1, 1]} : vector<432x49xf32> to vector<48x49xf32>
    %34 = vector.extract_strided_slice %33 {offsets = [0, 7], sizes = [48, 42], strides = [1, 1]} : vector<48x49xf32> to vector<48x42xf32>
    %35 = vector.extract_strided_slice %33 {offsets = [0, 0], sizes = [48, 7], strides = [1, 1]} : vector<48x49xf32> to vector<48x7xf32>
    %36 = tpu.concatenate %34, %35 in 1 : vector<48x42xf32>, vector<48x7xf32> -> vector<48x49xf32>
    %37 = vector.extract_strided_slice %7 {offsets = [384, 0], sizes = [48, 49], strides = [1, 1]} : vector<432x49xf32> to vector<48x49xf32>
    %38 = vector.extract_strided_slice %37 {offsets = [0, 8], sizes = [48, 41], strides = [1, 1]} : vector<48x49xf32> to vector<48x41xf32>
    %39 = vector.extract_strided_slice %37 {offsets = [0, 0], sizes = [48, 8], strides = [1, 1]} : vector<48x49xf32> to vector<48x8xf32>
    %40 = tpu.concatenate %38, %39 in 1 : vector<48x41xf32>, vector<48x8xf32> -> vector<48x49xf32>
    %41 = arith.addf %11, %15 : vector<48x49xf32>
    %42 = arith.addf %19, %23 : vector<48x49xf32>
    %43 = arith.addf %24, %28 : vector<48x49xf32>
    %44 = arith.addf %32, %36 : vector<48x49xf32>
    %45 = arith.addf %41, %42 : vector<48x49xf32>
    %46 = arith.addf %43, %44 : vector<48x49xf32>
    %47 = arith.addf %45, %46 : vector<48x49xf32>
    %48 = arith.addf %47, %40 : vector<48x49xf32>
    %c0_6 = arith.constant 0 : index
    %c0_7 = arith.constant 0 : index
    %49 = vector.load %arg3[%c0_6, %c0_7] : memref<48x49xf32, #tpu.memory_space<vmem>>, vector<48x49xf32>
    tpu.vector_store %arg3[%c0_6, %c0_7], %48 {strides = array<i32>} : memref<48x49xf32, #tpu.memory_space<vmem>>, vector<48x49xf32>,
    return
  }
}

</mosaic_0001>

<bundles_post_ra>
// kernel: relu_conv2d.1
= control target key start
LH: loop header
LB: loop body
LE: loop exit
PB: predicated region body
PF: predicated region fallthrough
CT: control target
= control target key end

     0   :  { %v1465_v0 = vmov 0   ;;  %vm372_vm0 = vcmask 523264   ;;  %s1467_s6 = smov 8   ;;  %s1468_s14 = smov 127   ;;  %vm853_vm1 = vcmask 64512   ;;  %vm1049_vm2 = vcmask 392192   ;;  %s2294_s0 = inlined_call_operand.vmem [shape: f32[192,49], index: 0, kind: input, shape index: {}]   ;;  %s2295_s1 = inlined_call_operand.vmem [shape: bf16[432,192], index: 1, kind: input, shape index: {}]   ;;  %s2296_s2 = inlined_call_operand.vmem [shape: f32[432,49], index: 2, kind: input, shape index: {}]   ;;  %s2297_s3 = inlined_call_operand.vmem [shape: f32[48,49], index: 3, kind: output, shape index: {}]  }
   0x1   :  { %454 = vmatprep.subr.bf16.mxu0 %v1465_v0  ;;  %v15_v1 = vld [vmem:[%s2294_s0] sm:$0xff]  ;;  %v16_v2 = vld [vmem:[%s2294_s0 + $0x8] sm:$0xff]  ;;  %v17_v3 = vld [vmem:[%s2294_s0 + $0x10] sm:$0xff]  ;;  %1343 = vmatprep.subr.bf16.mxu1 %v1465_v0  ;;  %s1469_s17 = smov 48   ;;  %s1470_s28 = smov 86   ;;  %vm902_vm3 = vcmask 56320  }
   0x2   :  { %v39_v4 = vmax.f32 %v15_v1, 0.0  ;;  %v40_v5 = vmax.f32 %v16_v2, 0.0  ;;  %v18_v6 = vld [vmem:[%s2294_s0 + $0x18] sm:$0xff]  ;;  %v41_v7 = vmax.f32 %v17_v3, 0.0  ;;  %v19_v9 = vld [vmem:[%s2294_s0 + $0x20] sm:$0xff]  ;;  %v20_v10 = vld [vmem:[%s2294_s0 + $0x28] sm:$0xff] }
   0x3   :  { %v42_v8 = vmax.f32 %v18_v6, 0.0  ;;  %v43_v13 = vmax.f32 %v19_v9, 0.0  ;;  %v44_v14 = vmax.f32 %v20_v10, 0.0  ;;  %v21_v15 = vld [vmem:[%s2294_s0 + $0x30] sm:$0xff]  ;;  %v22_v16 = vld [vmem:[%s2294_s0 + $0x38] sm:$0xff]  ;;  %v23_v20 = vld [vmem:[%s2294_s0 + $0x40] sm:$0xff] }
   0x4   :  { %v63_v11 = vpack.c.bf16 %v40_v5, %v39_v4  ;;  %v45_v18 = vmax.f32 %v21_v15, 0.0  ;;  %v46_v19 = vmax.f32 %v22_v16, 0.0  ;;  %v1386_v21 = vld [vmem:[%s2295_s1 + $0x4] ss:$8 sps:$4 sm:$0xff]   ;;  %v47_v25 = vmax.f32 %v23_v20, 0.0  ;;  %v25_v27 = vld [vmem:[%s2294_s0 + $0x50] sm:$0xff] }
   0x5   :  { %v64_v12 = vpack.c.bf16 %v42_v8, %v41_v7  ;;  %v65_v17 = vpack.c.bf16 %v44_v14, %v43_v13  ;;  %v24_v22 = vld [vmem:[%s2294_s0 + $0x48] sm:$0xff]  ;;  %1316 = vmatprep.mubr.msk.bf16.mxu0 %vm372_vm0, %v1386_v21  ;;  %v26_v28 = vld [vmem:[%s2294_s0 + $0x58] sm:$0xff]  ;;  %v49_v30 = vmax.f32 %v25_v27, 0.0  ;;  %v27_v32 = vld [vmem:[%s2294_s0 + $0x60] sm:$0xff]  ;;  %s1471_s4 = smov 7   ;;  %s1472_s13 = smov 122  }
   0x6   :  { %455 = vmatpush1.bf16.msra.mxu0 %v63_v11  ;;  %1355 = vmatpush1.bf16.msra.mxu1 %v63_v11  ;;  %v1389_v23 = vld [vmem:[%s2295_s1 + $0xe4] ss:$8 sps:$4 sm:$0xff]   ;;  %v66_v24 = vpack.c.bf16 %v46_v19, %v45_v18  ;;  %v48_v26 = vmax.f32 %v24_v22, 0.0  ;;  %v50_v31 = vmax.f32 %v26_v28, 0.0  ;;  %v51_v35 = vmax.f32 %v27_v32, 0.0  ;;  %v29_v37 = vld [vmem:[%s2294_s0 + $0x70] sm:$0xff] }
   0x7   :  { %456 = vmatprep.subr.bf16.mxu0 %v1465_v0  ;;  %1344 = vmatprep.subr.bf16.mxu1 %v1465_v0  ;;  %v28_v33 = vld [vmem:[%s2294_s0 + $0x68] sm:$0xff]  ;;  %v30_v38 = vld [vmem:[%s2294_s0 + $0x78] sm:$0xff]  ;;  %v53_v40 = vmax.f32 %v29_v37, 0.0  ;;  %v31_v42 = vld [vmem:[%s2294_s0 + $0x80] sm:$0xff]  ;;  %s1473_s16 = smov 43   ;;  %s1474_s27 = smov 85  }
   0x8   :  { %1330 = vmatprep.mubr.msk.bf16.mxu1 %vm372_vm0, %v1389_v23  ;;  %v67_v29 = vpack.c.bf16 %v48_v26, %v47_v25  ;;  %v68_v34 = vpack.c.bf16 %v50_v31, %v49_v30  ;;  %v52_v36 = vmax.f32 %v28_v33, 0.0  ;;  %v54_v41 = vmax.f32 %v30_v38, 0.0  ;;  %v32_v43 = vld [vmem:[%s2294_s0 + $0x88] sm:$0xff]  ;;  %v33_v47 = vld [vmem:[%s2294_s0 + $0x90] sm:$0xff]  ;;  %v34_v48 = vld [vmem:[%s2294_s0 + $0x98] sm:$0xff]  ;;  %s1475_s30 = smov 6  }
   0x9   :  { %v55_v45 = vmax.f32 %v31_v42, 0.0  ;;  %v56_v46 = vmax.f32 %v32_v43, 0.0  ;;  %v57_v50 = vmax.f32 %v33_v47, 0.0  ;;  %v58_v51 = vmax.f32 %v34_v48, 0.0  ;;  %v35_v52 = vld [vmem:[%s2294_s0 + $0xa0] sm:$0xff]  ;;  %v36_v53 = vld [vmem:[%s2294_s0 + $0xa8] sm:$0xff] }
   0xa   :  { %457 = vmatpush1.bf16.msra.mxu0 %v64_v12  ;;  %1356 = vmatpush1.bf16.msra.mxu1 %v64_v12  ;;  %v69_v39 = vpack.c.bf16 %v52_v36, %v51_v35  ;;  %v70_v44 = vpack.c.bf16 %v54_v41, %v53_v40  ;;  %v59_v55 = vmax.f32 %v35_v52, 0.0  ;;  %v60_v56 = vmax.f32 %v36_v53, 0.0  ;;  %v37_v57 = vld [vmem:[%s2294_s0 + $0xb0] sm:$0xff]  ;;  %v38_v58 = vld [vmem:[%s2294_s0 + $0xb8] sm:$0xff]  ;;  %v1384_v63 = vld [vmem:[%s2295_s1] ss:$8 sps:$4 sm:$0xff]  }
   0xb   :  { %458 = vmatprep.subr.bf16.mxu0 %v1465_v0  ;;  %1345 = vmatprep.subr.bf16.mxu1 %v1465_v0  ;;  %v71_v49 = vpack.c.bf16 %v56_v46, %v55_v45  ;;  %v72_v54 = vpack.c.bf16 %v58_v51, %v57_v50  ;;  %v61_v60 = vmax.f32 %v37_v57, 0.0  ;;  %v62_v61 = vmax.f32 %v38_v58, 0.0  ;;  %v1387_v1 = vld [vmem:[%s2295_s1 + $0xe0] ss:$8 sps:$4 sm:$0xff]   ;;  %v1390_v2 = vld [vmem:[%s2295_s1 + $0x14] ss:$8 sps:$4 sm:$0xff]  }
   0xc   :  { %v73_v59 = vpack.c.bf16 %v60_v56, %v59_v55  ;;  %v1393_v3 = vld [vmem:[%s2295_s1 + $0xf4] ss:$8 sps:$4 sm:$0xff]   ;;  %v1395_v4 = vld [vmem:[%s2295_s1 + $0xf0] ss:$8 sps:$4 sm:$0xff]   ;;  %v1396_v5 = vld [vmem:[%s2295_s1 + $0x24] ss:$8 sps:$4 sm:$0xff]  }
   0xd   :  { %v74_v62 = vpack.c.bf16 %v62_v61, %v61_v60  ;;  %v1399_v6 = vld [vmem:[%s2295_s1 + $0x104] ss:$8 sps:$4 sm:$0xff]   ;;  %v1398_v7 = vld [vmem:[%s2295_s1 + $0x20] ss:$8 sps:$4 sm:$0xff]   ;;  %v1402_v9 = vld [vmem:[%s2295_s1 + $0x34] ss:$8 sps:$4 sm:$0xff]  }
   0xe   :  { %459 = vmatpush1.bf16.msra.mxu0 %v65_v17  ;;  %1357 = vmatpush1.bf16.msra.mxu1 %v65_v17  ;;  %v1401_v8 = vld [vmem:[%s2295_s1 + $0x100] ss:$8 sps:$4 sm:$0xff]   ;;  %v1405_v10 = vld [vmem:[%s2295_s1 + $0x114] ss:$8 sps:$4 sm:$0xff]   ;;  %v1404_v11 = vld [vmem:[%s2295_s1 + $0x30] ss:$8 sps:$4 sm:$0xff]  }
   0xf   :  { %460 = vmatprep.subr.bf16.mxu0 %v1465_v0  ;;  %1346 = vmatprep.subr.bf16.mxu1 %v1465_v0  ;;  %v1407_v12 = vld [vmem:[%s2295_s1 + $0x110] ss:$8 sps:$4 sm:$0xff]   ;;  %v1408_v13 = vld [vmem:[%s2295_s1 + $0x44] ss:$8 sps:$4 sm:$0xff]   ;;  %v1410_v15 = vld [vmem:[%s2295_s1 + $0x40] ss:$8 sps:$4 sm:$0xff]  }
  0x10   :  { %v1411_v14 = vld [vmem:[%s2295_s1 + $0x124] ss:$8 sps:$4 sm:$0xff]   ;;  %v1413_v16 = vld [vmem:[%s2295_s1 + $0x120] ss:$8 sps:$4 sm:$0xff]   ;;  %v1414_v17 = vld [vmem:[%s2295_s1 + $0x54] ss:$8 sps:$4 sm:$0xff]  }
  0x11   :  { %v1417_v18 = vld [vmem:[%s2295_s1 + $0x134] ss:$8 sps:$4 sm:$0xff]   ;;  %v1416_v19 = vld [vmem:[%s2295_s1 + $0x50] ss:$8 sps:$4 sm:$0xff]   ;;  %v1420_v21 = vld [vmem:[%s2295_s1 + $0x64] ss:$8 sps:$4 sm:$0xff]  }
  0x12   :  { %461 = vmatpush1.bf16.msra.mxu0 %v66_v24  ;;  %1358 = vmatpush1.bf16.msra.mxu1 %v66_v24  ;;  %v1419_v20 = vld [vmem:[%s2295_s1 + $0x130] ss:$8 sps:$4 sm:$0xff]   ;;  %v1423_v22 = vld [vmem:[%s2295_s1 + $0x144] ss:$8 sps:$4 sm:$0xff]   ;;  %v1422_v23 = vld [vmem:[%s2295_s1 + $0x60] ss:$8 sps:$4 sm:$0xff]  }
  0x13   :  { %462 = vmatprep.subr.bf16.mxu0 %v1465_v0  ;;  %1347 = vmatprep.subr.bf16.mxu1 %v1465_v0  ;;  %v1427_v24 = vld [vmem:[%s2295_s1 + $0x140] ss:$8 sps:$4 sm:$0xff]   ;;  %v1425_v25 = vld [vmem:[%s2295_s1 + $0x74] ss:$8 sps:$4 sm:$0xff]   ;;  %v1428_v27 = vld [vmem:[%s2295_s1 + $0x70] ss:$8 sps:$4 sm:$0xff]  }
  0x14   :  { %v1432_v26 = vld [vmem:[%s2295_s1 + $0x154] ss:$8 sps:$4 sm:$0xff]   ;;  %v1436_v28 = vld [vmem:[%s2295_s1 + $0x150] ss:$8 sps:$4 sm:$0xff]   ;;  %v1441_v30 = vld [vmem:[%s2295_s1 + $0x164] ss:$8 sps:$4 sm:$0xff]  }
  0x15   :  { %v1431_v31 = vld [vmem:[%s2295_s1 + $0x80] ss:$8 sps:$4 sm:$0xff]   ;;  %v1434_v33 = vld [vmem:[%s2295_s1 + $0x94] ss:$8 sps:$4 sm:$0xff]   ;;  %v1437_v35 = vld [vmem:[%s2295_s1 + $0x90] ss:$8 sps:$4 sm:$0xff]  }
  0x16   :  { %463 = vmatpush1.bf16.msra.mxu0 %v67_v29  ;;  %1359 = vmatpush1.bf16.msra.mxu1 %v67_v29  ;;  %v1429_v29 = vld [vmem:[%s2295_s1 + $0x84] ss:$8 sps:$4 sm:$0xff]   ;;  %v1445_v32 = vld [vmem:[%s2295_s1 + $0x160] ss:$8 sps:$4 sm:$0xff]   ;;  %v1452_v36 = vld [vmem:[%s2295_s1 + $0x170] ss:$8 sps:$4 sm:$0xff]  }
  0x17   :  { %464 = vmatprep.subr.bf16.mxu0 %v1465_v0  ;;  %1348 = vmatprep.subr.bf16.mxu1 %v1465_v0  ;;  %v1438_v37 = vld [vmem:[%s2295_s1 + $0xa4] ss:$8 sps:$4 sm:$0xff]   ;;  %v1458_v40 = vld [vmem:[%s2295_s1 + $0x180] ss:$8 sps:$4 sm:$0xff]   ;;  %v1443_v41 = vld [vmem:[%s2295_s1 + $0xb4] ss:$8 sps:$4 sm:$0xff]  }
  0x18   :  { %v1456_v38 = vld [vmem:[%s2295_s1 + $0x184] ss:$8 sps:$4 sm:$0xff]   ;;  %v1459_v42 = vld [vmem:[%s2295_s1 + $0x194] ss:$8 sps:$4 sm:$0xff]   ;;  %v1446_v43 = vld [vmem:[%s2295_s1 + $0xb0] ss:$8 sps:$4 sm:$0xff]  }
  0x19   :  { %v1447_v45 = vld [vmem:[%s2295_s1 + $0xc4] ss:$8 sps:$4 sm:$0xff]   ;;  %v1449_v47 = vld [vmem:[%s2295_s1 + $0xc0] ss:$8 sps:$4 sm:$0xff]   ;;  %v1455_v50 = vld [vmem:[%s2295_s1 + $0xd0] ss:$8 sps:$4 sm:$0xff]  }
  0x1a   :  { %465 = vmatpush1.bf16.msra.mxu0 %v68_v34  ;;  %1360 = vmatpush1.bf16.msra.mxu1 %v68_v34  ;;  %v1450_v34 = vld [vmem:[%s2295_s1 + $0x174] ss:$8 sps:$4 sm:$0xff]   ;;  %v1462_v46 = vld [vmem:[%s2295_s1 + $0x1a4] ss:$8 sps:$4 sm:$0xff]   ;;  %v1464_v48 = vld [vmem:[%s2295_s1 + $0x1a0] ss:$8 sps:$4 sm:$0xff]  }
  0x1b   :  { %466 = vmatprep.subr.bf16.mxu0 %v1465_v0  ;;  %1349 = vmatprep.subr.bf16.mxu1 %v1465_v0  ;;  %v703_v51 = vld [vmem:[%s2296_s2] sm:$0xff]  ;;  %v704_v53 = vld [vmem:[%s2296_s2 + $0x8] sm:$0xff]  ;;  %s1476_s12 = smov 121   ;;  %s1477_s15 = smov 42   ;;  %vm1098_vm4 = vcmask 351232   ;;  %vm951_vm5 = vcmask 48128  }
  0x1c   :  { %s1480_s19 = smov 120   ;;  %s1481_s24 = smov 41   ;;  %vm1147_vm6 = vcmask 343040   ;;  %vm1000_vm7 = vcmask 7168   ;;  %vm1196_vm8 = vcmask 334848   ;;  %vm1251_vm9 = vcmask 400384  }
  0x1e   :  { %467 = vmatpush1.bf16.msra.mxu0 %v69_v39  ;;  %1361 = vmatpush1.bf16.msra.mxu1 %v69_v39  ;;  %v1440_v39 = vld [vmem:[%s2295_s1 + $0xa0] ss:$8 sps:$4 sm:$0xff]  }
  0x1f   :  { %468 = vmatprep.subr.bf16.mxu0 %v1465_v0  ;;  %1350 = vmatprep.subr.bf16.mxu1 %v1465_v0 }
  0x22   :  { %469 = vmatpush1.bf16.msra.mxu0 %v70_v44  ;;  %1362 = vmatpush1.bf16.msra.mxu1 %v70_v44  ;;  %v1461_v44 = vld [vmem:[%s2295_s1 + $0x190] ss:$8 sps:$4 sm:$0xff]  }
  0x23   :  { %470 = vmatprep.subr.bf16.mxu0 %v1465_v0  ;;  %1351 = vmatprep.subr.bf16.mxu1 %v1465_v0 }
  0x26   :  { %471 = vmatpush1.bf16.msra.mxu0 %v71_v49  ;;  %1363 = vmatpush1.bf16.msra.mxu1 %v71_v49  ;;  %v1453_v49 = vld [vmem:[%s2295_s1 + $0xd4] ss:$8 sps:$4 sm:$0xff]  }
  0x27   :  { %472 = vmatprep.subr.bf16.mxu0 %v1465_v0  ;;  %1352 = vmatprep.subr.bf16.mxu1 %v1465_v0 }
  0x2a   :  { %473 = vmatpush1.bf16.msra.mxu0 %v72_v54  ;;  %1364 = vmatpush1.bf16.msra.mxu1 %v72_v54 }
  0x2b   :  { %474 = vmatprep.subr.bf16.mxu0 %v1465_v0  ;;  %1353 = vmatprep.subr.bf16.mxu1 %v1465_v0 }
  0x2e   :  { %475 = vmatpush1.bf16.msra.mxu0 %v73_v59  ;;  %1365 = vmatpush1.bf16.msra.mxu1 %v73_v59 }
  0x2f   :  { %476 = vmatprep.subr.bf16.mxu0 %v1465_v0  ;;  %1354 = vmatprep.subr.bf16.mxu1 %v1465_v0  ;;  %v1392_v0 = vld [vmem:[%s2295_s1 + $0x10] ss:$8 sps:$4 sm:$0xff]   ;;  %s1466_s1 = smov 87  }
  0x32   :  { %477 = vmatpush1.bf16.msra.mxu0 %v74_v62  ;;  %1366 = vmatpush1.bf16.msra.mxu1 %v74_v62 }
  0x35   :  { %487 = vmatmul.mubr.bf16.vlgmr.msra.gmra.mrb[0].mxu0 %v1384_v63  ;;  %599 = vmatmul.mubr.bf16.vlgmr.msra.gmra.mrb[0].mxu1 %v1387_v1  ;;  %v705_v63 = vld [vmem:[%s2296_s2 + $0x10] sm:$0xff] }
  0x36   :  { %1317 = vmatprep.mubr.msk.bf16.mxu0 %vm372_vm0, %v1390_v2  ;;  %1331 = vmatprep.mubr.msk.bf16.mxu1 %vm372_vm0, %v1393_v3 }
  0x3d   :  { %495 = vmatmul.mubr.bf16.gmra.mrb[4].mxu0 %v1392_v0  ;;  %607 = vmatmul.mubr.bf16.gmra.mrb[4].mxu1 %v1395_v4 }
  0x3e   :  { %1318 = vmatprep.mubr.msk.bf16.mxu0 %vm372_vm0, %v1396_v5  ;;  %1332 = vmatprep.mubr.msk.bf16.mxu1 %vm372_vm0, %v1399_v6  ;;  %v706_v6 = vld [vmem:[%s2296_s2 + $0x18] sm:$0xff] }
  0x45   :  { %503 = vmatmul.mubr.bf16.gmra.mrb[8].mxu0 %v1398_v7  ;;  %615 = vmatmul.mubr.bf16.gmra.mrb[8].mxu1 %v1401_v8 }
  0x46   :  { %1319 = vmatprep.mubr.msk.bf16.mxu0 %vm372_vm0, %v1402_v9  ;;  %1333 = vmatprep.mubr.msk.bf16.mxu1 %vm372_vm0, %v1405_v10  ;;  %v733_v10 = vld [vmem:[%s2296_s2 + $0xf0] sm:$0xff] }
  0x4d   :  { %511 = vmatmul.mubr.bf16.gmra.mrb[12].mxu0 %v1404_v11  ;;  %623 = vmatmul.mubr.bf16.gmra.mrb[12].mxu1 %v1407_v12 }
  0x4e   :  { %1320 = vmatprep.mubr.msk.bf16.mxu0 %vm372_vm0, %v1408_v13  ;;  %1334 = vmatprep.mubr.msk.bf16.mxu1 %vm372_vm0, %v1411_v14 }
  0x55   :  { %519 = vmatmul.mubr.bf16.gmra.mrb[16].mxu0 %v1410_v15  ;;  %631 = vmatmul.mubr.bf16.gmra.mrb[16].mxu1 %v1413_v16 }
  0x56   :  { %1321 = vmatprep.mubr.msk.bf16.mxu0 %vm372_vm0, %v1414_v17  ;;  %1335 = vmatprep.mubr.msk.bf16.mxu1 %vm372_vm0, %v1417_v18  ;;  %v734_v17 = vld [vmem:[%s2296_s2 + $0xf8] sm:$0xff] }
  0x5d   :  { %527 = vmatmul.mubr.bf16.gmra.mrb[20].mxu0 %v1416_v19  ;;  %639 = vmatmul.mubr.bf16.gmra.mrb[20].mxu1 %v1419_v20 }
  0x5e   :  { %1322 = vmatprep.mubr.msk.bf16.mxu0 %vm372_vm0, %v1420_v21  ;;  %1336 = vmatprep.mubr.msk.bf16.mxu1 %vm372_vm0, %v1423_v22  ;;  %v707_v22 = vld [vmem:[%s2296_s2 + $0x20] sm:$0xff] }
  0x65   :  { %535 = vmatmul.mubr.bf16.gmra.mrb[24].mxu0 %v1422_v23  ;;  %647 = vmatmul.mubr.bf16.gmra.mrb[24].mxu1 %v1427_v24 }
  0x66   :  { %1323 = vmatprep.mubr.msk.bf16.mxu0 %vm372_vm0, %v1425_v25  ;;  %1337 = vmatprep.mubr.msk.bf16.mxu1 %vm372_vm0, %v1432_v26 }
  0x6d   :  { %543 = vmatmul.mubr.bf16.gmra.mrb[28].mxu0 %v1428_v27  ;;  %655 = vmatmul.mubr.bf16.gmra.mrb[28].mxu1 %v1436_v28 }
  0x6e   :  { %1324 = vmatprep.mubr.msk.bf16.mxu0 %vm372_vm0, %v1429_v29  ;;  %1338 = vmatprep.mubr.msk.bf16.mxu1 %vm372_vm0, %v1441_v30  ;;  %v708_v29 = vld [vmem:[%s2296_s2 + $0x28] sm:$0xff] }
  0x75   :  { %551 = vmatmul.mubr.bf16.gmra.mrb[32].mxu0 %v1431_v31  ;;  %663 = vmatmul.mubr.bf16.gmra.mrb[32].mxu1 %v1445_v32 }
  0x76   :  { %1325 = vmatprep.mubr.msk.bf16.mxu0 %vm372_vm0, %v1434_v33  ;;  %1339 = vmatprep.mubr.msk.bf16.mxu1 %vm372_vm0, %v1450_v34  ;;  %v735_v34 = vld [vmem:[%s2296_s2 + $0x100] sm:$0xff] }
  0x7d   :  { %559 = vmatmul.mubr.bf16.gmra.mrb[36].mxu0 %v1437_v35  ;;  %671 = vmatmul.mubr.bf16.gmra.mrb[36].mxu1 %v1452_v36 }
  0x7e   :  { %1326 = vmatprep.mubr.msk.bf16.mxu0 %vm372_vm0, %v1438_v37  ;;  %1340 = vmatprep.mubr.msk.bf16.mxu1 %vm372_vm0, %v1456_v38 }
  0x85   :  { %567 = vmatmul.mubr.bf16.gmra.mrb[40].mxu0 %v1440_v39  ;;  %679 = vmatmul.mubr.bf16.gmra.mrb[40].mxu1 %v1458_v40 }
  0x86   :  { %1327 = vmatprep.mubr.msk.bf16.mxu0 %vm372_vm0, %v1443_v41  ;;  %1341 = vmatprep.mubr.msk.bf16.mxu1 %vm372_vm0, %v1459_v42  ;;  %v736_v41 = vld [vmem:[%s2296_s2 + $0x108] sm:$0xff] }
  0x8d   :  { %575 = vmatmul.mubr.bf16.gmra.mrb[44].mxu0 %v1446_v43  ;;  %687 = vmatmul.mubr.bf16.gmra.mrb[44].mxu1 %v1461_v44 }
  0x8e   :  { %1328 = vmatprep.mubr.msk.bf16.mxu0 %vm372_vm0, %v1447_v45  ;;  %1342 = vmatprep.mubr.msk.bf16.mxu1 %vm372_vm0, %v1462_v46  ;;  %v709_v46 = vld [vmem:[%s2296_s2 + $0x30] sm:$0xff] }
  0x95   :  { %583 = vmatmul.mubr.bf16.gmra.mrb[48].mxu0 %v1449_v47  ;;  %695 = vmatmul.mubr.bf16.gmra.mrb[48].mxu1 %v1464_v48 }
  0x96   :  { %1329 = vmatprep.mubr.msk.bf16.mxu0 %vm372_vm0, %v1453_v49 }
  0x9d   :  { %591 = vmatmul.mubr.bf16.gmra.mrb[52].mxu0 %v1455_v50 }
 0x108   :  { %v488_v52 = vpop.f32.mrb[0].mxu0  ;;  %v1793_v54 = vpop.f32.mrb[0].mxu1 }
 0x109   :  { %v757_v55 = vmul.f32 %v703_v51, %v488_v52  ;;  %v490_v56 = vpop.f32.mrb[1].mxu0  ;;  %v602_v57 = vpop.f32.mrb[1].mxu1 }
 0x10a   :  { %v491_v58 = vpop.f32.mrb[2].mxu0  ;;  %v1795_v59 = vpop.f32.mrb[2].mxu1 }
 0x10b   :  { %v758_v60 = vmul.f32 %v704_v53, %v491_v58  ;;  %817 = vrot.lane.b32.xlu0 %v757_v55, %s1466_s1  ;;  %v493_v61 = vpop.f32.mrb[3].mxu0  ;;  %v605_v62 = vpop.f32.mrb[3].mxu1  ;;  %v710_v53 = vld [vmem:[%s2296_s2 + $0x38] sm:$0xff] }
 0x10d   :  { %837 = vrot.lane.b32.xlu1 %v758_v60, %s1467_s6 }
 0x10f   :  { %835 = vrot.lane.b32.xlu0 %v757_v55, %s1467_s6 }
 0x110   :  { %v496_v1 = vpop.f32.mrb[4].mxu0  ;;  %v608_v2 = vpop.f32.mrb[4].mxu1 }
 0x111   :  { %v759_v3 = vmul.f32 %v705_v63, %v496_v1  ;;  %v498_v0 = vpop.f32.mrb[5].mxu0  ;;  %v610_v4 = vpop.f32.mrb[5].mxu1  ;;  %v787_v12 = vmul.f32 %v733_v10, %v608_v2 }
 0x112   :  { %v499_v5 = vpop.f32.mrb[6].mxu0  ;;  %v611_v7 = vpop.f32.mrb[6].mxu1  ;;  %v738_v0 = vld [vmem:[%s2296_s2 + $0x118] sm:$0xff] }
 0x113   :  { %819 = vrot.lane.b32.xlu0 %v758_v60, %s1466_s1  ;;  %821 = vrot.lane.b32.xlu1 %v759_v3, %s1466_s1  ;;  %v501_v8 = vpop.f32.mrb[7].mxu0  ;;  %v613_v9 = vpop.f32.mrb[7].mxu1  ;;  %v760_v11 = vmul.f32 %v706_v6, %v499_v5  ;;  %v788_v23 = vmul.f32 %v734_v17, %v611_v7  ;;  %v737_v60 = vld [vmem:[%s2296_s2 + $0x110] sm:$0xff] }
 0x114   :  { %v711_v8 = vld [vmem:[%s2296_s2 + $0x40] sm:$0xff] }
 0x117   :  { %839 = vrot.lane.b32.xlu0 %v759_v3, %s1467_s6  ;;  %823 = vrot.lane.b32.xlu1 %v760_v11, %s1466_s1 }
 0x118   :  { %v504_v13 = vpop.f32.mrb[8].mxu0  ;;  %v616_v14 = vpop.f32.mrb[8].mxu1 }
 0x119   :  { %v506_v15 = vpop.f32.mrb[9].mxu0  ;;  %v618_v16 = vpop.f32.mrb[9].mxu1  ;;  %v761_v24 = vmul.f32 %v707_v22, %v504_v13  ;;  %v789_v36 = vmul.f32 %v735_v34, %v616_v14 }
 0x11a   :  { %v507_v18 = vpop.f32.mrb[10].mxu0  ;;  %v619_v19 = vpop.f32.mrb[10].mxu1  ;;  %v712_v15 = vld [vmem:[%s2296_s2 + $0x48] sm:$0xff] }
 0x11b   :  { %1013 = vrot.lane.b32.xlu0 %v787_v12, %s1468_s14  ;;  %841 = vrot.lane.b32.xlu1 %v760_v11, %s1467_s6  ;;  %v509_v20 = vpop.f32.mrb[11].mxu0  ;;  %v621_v21 = vpop.f32.mrb[11].mxu1  ;;  %v762_v35 = vmul.f32 %v708_v29, %v507_v18  ;;  %v790_v47 = vmul.f32 %v736_v41, %v619_v19 }
 0x11c   :  { %v739_v20 = vld [vmem:[%s2296_s2 + $0x120] sm:$0xff] }
 0x11f   :  { %1031 = vrot.lane.b32.xlu0 %v787_v12, %s1469_s17  ;;  %1015 = vrot.lane.b32.xlu1 %v788_v23, %s1468_s14 }
 0x120   :  { %v512_v25 = vpop.f32.mrb[12].mxu0  ;;  %v624_v26 = vpop.f32.mrb[12].mxu1 }
 0x121   :  { %v514_v27 = vpop.f32.mrb[13].mxu0  ;;  %v626_v28 = vpop.f32.mrb[13].mxu1  ;;  %v763_v48 = vmul.f32 %v709_v46, %v512_v25  ;;  %v791_v62 = vmul.f32 %v737_v60, %v624_v26 }
 0x122   :  { %v515_v30 = vpop.f32.mrb[14].mxu0  ;;  %v627_v31 = vpop.f32.mrb[14].mxu1  ;;  %v740_v27 = vld [vmem:[%s2296_s2 + $0x128] sm:$0xff] }
 0x123   :  { %1033 = vrot.lane.b32.xlu1 %v788_v23, %s1469_s17  ;;  %825 = vrot.lane.b32.xlu0 %v761_v24, %s1466_s1  ;;  %v517_v32 = vpop.f32.mrb[15].mxu0  ;;  %v629_v33 = vpop.f32.mrb[15].mxu1  ;;  %v764_v61 = vmul.f32 %v710_v53, %v515_v30  ;;  %v792_v9 = vmul.f32 %v738_v0, %v627_v31 }
 0x124   :  { %v713_v32 = vld [vmem:[%s2296_s2 + $0x50] sm:$0xff] }
 0x127   :  { %843 = vrot.lane.b32.xlu0 %v761_v24, %s1467_s6  ;;  %827 = vrot.lane.b32.xlu1 %v762_v35, %s1466_s1  ;;  %s1479_s1 = smov 1  }
 0x128   :  { %v520_v37 = vpop.f32.mrb[16].mxu0  ;;  %v632_v38 = vpop.f32.mrb[16].mxu1 }
 0x129   :  { %v522_v39 = vpop.f32.mrb[17].mxu0  ;;  %v634_v40 = vpop.f32.mrb[17].mxu1  ;;  %v765_v10 = vmul.f32 %v711_v8, %v520_v37  ;;  %v793_v22 = vmul.f32 %v739_v20, %v632_v38  ;;  %v744_v20 = vld [vmem:[%s2296_s2 + $0x148] sm:$0xff] }
 0x12a   :  { %v523_v42 = vpop.f32.mrb[18].mxu0  ;;  %v1836_v43 = vpop.f32.mrb[18].mxu1  ;;  %v714_v39 = vld [vmem:[%s2296_s2 + $0x58] sm:$0xff] }
 0x12b   :  { %1017 = vrot.lane.b32.xlu0 %v789_v36, %s1468_s14  ;;  %845 = vrot.lane.b32.xlu1 %v762_v35, %s1467_s6  ;;  %v525_v44 = vpop.f32.mrb[19].mxu0  ;;  %v637_v45 = vpop.f32.mrb[19].mxu1  ;;  %v766_v21 = vmul.f32 %v712_v15, %v523_v42  ;;  %v794_v33 = vmul.f32 %v740_v27, %v1836_v43 }
 0x12c   :  { %v741_v44 = vld [vmem:[%s2296_s2 + $0x130] sm:$0xff] }
 0x12f   :  { %1035 = vrot.lane.b32.xlu0 %v789_v36, %s1469_s17  ;;  %1019 = vrot.lane.b32.xlu1 %v790_v47, %s1468_s14 }
 0x130   :  { %v1845_v49 = vpop.f32.mrb[20].mxu0  ;;  %v1847_v50 = vpop.f32.mrb[20].mxu1 }
 0x131   :  { %v530_v51 = vpop.f32.mrb[21].mxu0  ;;  %v642_v52 = vpop.f32.mrb[21].mxu1  ;;  %v767_v34 = vmul.f32 %v713_v32, %v1845_v49  ;;  %v795_v46 = vmul.f32 %v741_v44, %v1847_v50  ;;  %v718_v32 = vld [vmem:[%s2296_s2 + $0x78] sm:$0xff] }
 0x132   :  { %v1852_v55 = vpop.f32.mrb[22].mxu0  ;;  %v1854_v56 = vpop.f32.mrb[22].mxu1  ;;  %v742_v52 = vld [vmem:[%s2296_s2 + $0x138] sm:$0xff] }
 0x133   :  { %1037 = vrot.lane.b32.xlu1 %v790_v47, %s1469_s17  ;;  %866 = vrot.lane.b32.xlu0 %v763_v48, %s1470_s28  ;;  %v533_v57 = vpop.f32.mrb[23].mxu0  ;;  %v645_v58 = vpop.f32.mrb[23].mxu1  ;;  %v768_v45 = vmul.f32 %v714_v39, %v1852_v55  ;;  %v796_v60 = vmul.f32 %v742_v52, %v1854_v56  ;;  %v719_v39 = vld [vmem:[%s2296_s2 + $0x80] sm:$0xff] }
 0x134   :  { %v715_v58 = vld [vmem:[%s2296_s2 + $0x60] sm:$0xff] }
 0x137   :  { %884 = vrot.lane.b32.xlu0 %v763_v48, %s1471_s4  ;;  %868 = vrot.lane.b32.xlu1 %v764_v61, %s1470_s28 }
 0x138   :  { %v1863_v63 = vpop.f32.mrb[24].mxu0  ;;  %v1865_v1 = vpop.f32.mrb[24].mxu1 }
 0x139   :  { %v538_v2 = vpop.f32.mrb[25].mxu0  ;;  %v650_v3 = vpop.f32.mrb[25].mxu1 }
 0x13a   :  { %v1870_v4 = vpop.f32.mrb[26].mxu0  ;;  %v1872_v5 = vpop.f32.mrb[26].mxu1 }
 0x13b   :  { %1021 = vrot.lane.b32.xlu0 %v791_v62, %s1468_s14  ;;  %886 = vrot.lane.b32.xlu1 %v764_v61, %s1471_s4  ;;  %v541_v6 = vpop.f32.mrb[27].mxu0  ;;  %v653_v7 = vpop.f32.mrb[27].mxu1  ;;  %v769_v61 = vmul.f32 %v715_v58, %v1863_v63 }
 0x13c   :  { %v716_v6 = vld [vmem:[%s2296_s2 + $0x68] sm:$0xff] }
 0x13f   :  { %1039 = vrot.lane.b32.xlu0 %v791_v62, %s1469_s17  ;;  %1023 = vrot.lane.b32.xlu1 %v792_v9, %s1468_s14 }
 0x140   :  { %v1881_v11 = vpop.f32.mrb[28].mxu0  ;;  %v1883_v12 = vpop.f32.mrb[28].mxu1 }
 0x141   :  { %v546_v13 = vpop.f32.mrb[29].mxu0  ;;  %v658_v14 = vpop.f32.mrb[29].mxu1 }
 0x142   :  { %v1888_v16 = vpop.f32.mrb[30].mxu0  ;;  %v1890_v17 = vpop.f32.mrb[30].mxu1 }
 0x143   :  { %1041 = vrot.lane.b32.xlu1 %v792_v9, %s1469_s17  ;;  %870 = vrot.lane.b32.xlu0 %v765_v10, %s1470_s28  ;;  %v549_v18 = vpop.f32.mrb[31].mxu0  ;;  %v661_v19 = vpop.f32.mrb[31].mxu1  ;;  %v743_v9 = vld [vmem:[%s2296_s2 + $0x140] sm:$0xff] }
 0x144   :  { %v797_v13 = vmul.f32 %v743_v9, %v1865_v1 }
 0x147   :  { %888 = vrot.lane.b32.xlu0 %v765_v10, %s1471_s4  ;;  %872 = vrot.lane.b32.xlu1 %v766_v21, %s1470_s28  ;;  %v770_v10 = vmul.f32 %v716_v6, %v1870_v4 }
 0x148   :  { %v1899_v23 = vpop.f32.mrb[32].mxu0  ;;  %v1901_v24 = vpop.f32.mrb[32].mxu1 }
 0x149   :  { %v554_v25 = vpop.f32.mrb[33].mxu0  ;;  %v666_v26 = vpop.f32.mrb[33].mxu1 }
 0x14a   :  { %v1906_v28 = vpop.f32.mrb[34].mxu0  ;;  %v1908_v29 = vpop.f32.mrb[34].mxu1  ;;  %v717_v25 = vld [vmem:[%s2296_s2 + $0x70] sm:$0xff]  ;;  %v798_v26 = vmul.f32 %v744_v20, %v1872_v5 }
 0x14b   :  { %1062 = vrot.lane.b32.xlu0 %v793_v22, %s1472_s13  ;;  %890 = vrot.lane.b32.xlu1 %v766_v21, %s1471_s4  ;;  %v557_v30 = vpop.f32.mrb[35].mxu0  ;;  %v669_v31 = vpop.f32.mrb[35].mxu1  ;;  %v771_v27 = vmul.f32 %v717_v25, %v1881_v11  ;;  %v772_v11 = vmul.f32 %v718_v32, %v1888_v16  ;;  %v749_v20 = vld [vmem:[%s2296_s2 + $0x170] sm:$0xff] }
 0x14f   :  { %1080 = vrot.lane.b32.xlu0 %v793_v22, %s1473_s16  ;;  %1064 = vrot.lane.b32.xlu1 %v794_v33, %s1472_s13 }
 0x150   :  { %v1919_v35 = vpop.f32.mrb[36].mxu0  ;;  %v1921_v36 = vpop.f32.mrb[36].mxu1 }
 0x151   :  { %v562_v37 = vpop.f32.mrb[37].mxu0  ;;  %v674_v38 = vpop.f32.mrb[37].mxu1 }
 0x152   :  { %v1926_v40 = vpop.f32.mrb[38].mxu0  ;;  %v1928_v41 = vpop.f32.mrb[38].mxu1  ;;  %v746_v38 = vld [vmem:[%s2296_s2 + $0x158] sm:$0xff] }
 0x153   :  { %1082 = vrot.lane.b32.xlu1 %v794_v33, %s1473_s16  ;;  %874 = vrot.lane.b32.xlu0 %v767_v34, %s1470_s28  ;;  %v565_v42 = vpop.f32.mrb[39].mxu0  ;;  %v677_v43 = vpop.f32.mrb[39].mxu1  ;;  %v800_v16 = vmul.f32 %v746_v38, %v1890_v17  ;;  %v747_v17 = vld [vmem:[%s2296_s2 + $0x160] sm:$0xff] }
 0x154   :  { %v773_v42 = vmul.f32 %v719_v39, %v1899_v23 }
 0x157   :  { %892 = vrot.lane.b32.xlu0 %v767_v34, %s1471_s4  ;;  %876 = vrot.lane.b32.xlu1 %v768_v45, %s1470_s28  ;;  %v745_v34 = vld [vmem:[%s2296_s2 + $0x150] sm:$0xff] }
 0x158   :  { %v1939_v47 = vpop.f32.mrb[40].mxu0  ;;  %v1941_v48 = vpop.f32.mrb[40].mxu1  ;;  %v799_v37 = vmul.f32 %v745_v34, %v1883_v12  ;;  %v729_v34 = vld [vmem:[%s2296_s2 + $0xd0] sm:$0xff] }
 0x159   :  { %v570_v49 = vpop.f32.mrb[41].mxu0  ;;  %v682_v51 = vpop.f32.mrb[41].mxu1 }
 0x15a   :  { %v1946_v53 = vpop.f32.mrb[42].mxu0  ;;  %v1948_v57 = vpop.f32.mrb[42].mxu1 }
 0x15b   :  { %1066 = vrot.lane.b32.xlu0 %v795_v46, %s1472_s13  ;;  %894 = vrot.lane.b32.xlu1 %v768_v45, %s1471_s4  ;;  %v573_v50 = vpop.f32.mrb[43].mxu0  ;;  %v685_v55 = vpop.f32.mrb[43].mxu1 }
 0x15c   :  { %v801_v50 = vmul.f32 %v747_v17, %v1901_v24  ;;  %v721_v24 = vld [vmem:[%s2296_s2 + $0x90] sm:$0xff] }
 0x15f   :  { %1084 = vrot.lane.b32.xlu0 %v795_v46, %s1473_s16  ;;  %1068 = vrot.lane.b32.xlu1 %v796_v60, %s1472_s13  ;;  %v720_v46 = vld [vmem:[%s2296_s2 + $0x88] sm:$0xff] }
 0x160   :  { %v1959_v62 = vpop.f32.mrb[44].mxu0  ;;  %v1961_v2 = vpop.f32.mrb[44].mxu1  ;;  %v774_v23 = vmul.f32 %v720_v46, %v1906_v28  ;;  %v727_v28 = vld [vmem:[%s2296_s2 + $0xc0] sm:$0xff] }
 0x161   :  { %v578_v3 = vpop.f32.mrb[45].mxu0  ;;  %v690_v0 = vpop.f32.mrb[45].mxu1 }
 0x162   :  { %v1966_v7 = vpop.f32.mrb[46].mxu0  ;;  %v1968_v8 = vpop.f32.mrb[46].mxu1 }
 0x163   :  { %1086 = vrot.lane.b32.xlu1 %v796_v60, %s1473_s16  ;;  %915 = vrot.lane.b32.xlu0 %v769_v61, %s1474_s27  ;;  %v581_v56 = vpop.f32.mrb[47].mxu0  ;;  %v693_v63 = vpop.f32.mrb[47].mxu1  ;;  %v748_v60 = vld [vmem:[%s2296_s2 + $0x168] sm:$0xff] }
 0x164   :  { %v802_v3 = vmul.f32 %v748_v60, %v1908_v29  ;;  %v775_v63 = vmul.f32 %v721_v24, %v1919_v35  ;;  %v752_v24 = vld [vmem:[%s2296_s2 + $0x188] sm:$0xff] }
 0x167   :  { %933 = vrot.lane.b32.xlu0 %v769_v61, %s1475_s30  ;;  %917 = vrot.lane.b32.xlu1 %v770_v10, %s1474_s27 }
 0x168   :  { %v1979_v14 = vpop.f32.mrb[48].mxu0  ;;  %v1981_v15 = vpop.f32.mrb[48].mxu1 }
 0x169   :  { %v586_v18 = vpop.f32.mrb[49].mxu0  ;;  %v698_v19 = vpop.f32.mrb[49].mxu1  ;;  %v781_v9 = vmul.f32 %v727_v28, %v1979_v14 }
 0x16a   :  { %v1986_v21 = vpop.f32.mrb[50].mxu0  ;;  %v1988_v4 = vpop.f32.mrb[50].mxu1  ;;  %v722_v18 = vld [vmem:[%s2296_s2 + $0x98] sm:$0xff] }
 0x16b   :  { %1070 = vrot.lane.b32.xlu0 %v797_v13, %s1472_s13  ;;  %935 = vrot.lane.b32.xlu1 %v770_v10, %s1475_s30  ;;  %v589_v1 = vpop.f32.mrb[51].mxu0  ;;  %v701_v22 = vpop.f32.mrb[51].mxu1  ;;  %v728_v10 = vld [vmem:[%s2296_s2 + $0xc8] sm:$0xff] }
 0x16c   :  { %v782_v14 = vmul.f32 %v728_v10, %v1986_v21  ;;  %v776_v1 = vmul.f32 %v722_v18, %v1926_v40  ;;  %v732_v18 = vld [vmem:[%s2296_s2 + $0xe8] sm:$0xff] }
 0x16f   :  { %1088 = vrot.lane.b32.xlu0 %v797_v13, %s1473_s16  ;;  %1072 = vrot.lane.b32.xlu1 %v798_v26, %s1472_s13 }
 0x170   :  { %v1999_v30 = vpop.f32.mrb[52].mxu0 }
 0x171   :  { %v594_v31 = vpop.f32.mrb[53].mxu0 }
 0x172   :  { %v2004_v33 = vpop.f32.mrb[54].mxu0  ;;  %v803_v31 = vmul.f32 %v749_v20, %v1921_v36  ;;  %v723_v36 = vld [vmem:[%s2296_s2 + $0xa0] sm:$0xff] }
 0x173   :  { %1090 = vrot.lane.b32.xlu1 %v798_v26, %s1473_s16  ;;  %919 = vrot.lane.b32.xlu0 %v771_v27, %s1474_s27  ;;  %v597_v5 = vpop.f32.mrb[55].mxu0 }
 0x174   :  { %v750_v5 = vld [vmem:[%s2296_s2 + $0x178] sm:$0xff] }
 0x177   :  { %937 = vrot.lane.b32.xlu0 %v771_v27, %s1475_s30  ;;  %921 = vrot.lane.b32.xlu1 %v772_v11, %s1474_s27 }
 0x17b   :  { %1111 = vrot.lane.b32.xlu0 %v799_v37, %s1476_s12  ;;  %939 = vrot.lane.b32.xlu1 %v772_v11, %s1475_s30  ;;  %v804_v11 = vmul.f32 %v750_v5, %v1928_v41  ;;  %v724_v41 = vld [vmem:[%s2296_s2 + $0xa8] sm:$0xff] }
 0x17d   :  { %v818_v12 = vpop.permute.xlu0 %817 }
 0x17f   :  { %1129 = vrot.lane.b32.xlu0 %v799_v37, %s1477_s15  ;;  %1113 = vrot.lane.b32.xlu1 %v800_v16, %s1476_s12  ;;  %v838_v43 = vpop.permute.xlu1 %837 }
 0x181   :  { %v836_v44 = vpop.permute.xlu0 %835 }
 0x182   :  { %v2028_v45 = vsel %vm853_vm1, %v818_v12, %v836_v44  ;;  %v783_v12 = vmul.f32 %v729_v34, %v1999_v30  ;;  %v751_v30 = vld [vmem:[%s2296_s2 + $0x180] sm:$0xff] }
 0x183   :  { %1131 = vrot.lane.b32.xlu1 %v800_v16, %s1477_s15  ;;  %923 = vrot.lane.b32.xlu0 %v773_v42, %s1474_s27  ;;  %v777_v16 = vmul.f32 %v723_v36, %v1939_v47 }
 0x185   :  { %v820_v49 = vpop.permute.xlu0 %819  ;;  %v822_v51 = vpop.permute.xlu1 %821 }
 0x186   :  { %v2040_v52 = vsel %vm853_vm1, %v820_v49, %v838_v43 }
 0x187   :  { %941 = vrot.lane.b32.xlu0 %v773_v42, %s1475_s30  ;;  %925 = vrot.lane.b32.xlu1 %v774_v23, %s1474_s27  ;;  %v730_v42 = vld [vmem:[%s2296_s2 + $0xd8] sm:$0xff] }
 0x188   :  { %v784_v47 = vmul.f32 %v730_v42, %v2004_v33 }
 0x189   :  { %v840_v55 = vpop.permute.xlu0 %839  ;;  %v824_v58 = vpop.permute.xlu1 %823 }
 0x18a   :  { %v2049_v61 = vsel %vm853_vm1, %v822_v51, %v840_v55 }
 0x18b   :  { %1115 = vrot.lane.b32.xlu0 %v801_v50, %s1476_s12  ;;  %943 = vrot.lane.b32.xlu1 %v774_v23, %s1475_s30  ;;  %s1478_s30 = smov 80   ;;  %v778_v23 = vmul.f32 %v724_v41, %v1946_v53 }
 0x18d   :  { %v1014_v0 = vpop.permute.xlu0 %1013  ;;  %v842_v6 = vpop.permute.xlu1 %841 }
 0x18e   :  { %v2061_v56 = vsel %vm853_vm1, %v824_v58, %v842_v6  ;;  %v805_v58 = vmul.f32 %v751_v30, %v1941_v48  ;;  %v725_v48 = vld [vmem:[%s2296_s2 + $0xb0] sm:$0xff] }
 0x18f   :  { %1133 = vrot.lane.b32.xlu0 %v801_v50, %s1477_s15  ;;  %1117 = vrot.lane.b32.xlu1 %v802_v3, %s1476_s12 }
 0x191   :  { %v1032_v13 = vpop.permute.xlu0 %1031  ;;  %v1016_v29 = vpop.permute.xlu1 %1015 }
 0x192   :  { %v1050_v19 = vsel %vm1049_vm2, %v1014_v0, %v1032_v13 }
 0x193   :  { %v2074_v35 = vadd.f32 %v1050_v19, %v781_v9  ;;  %1135 = vrot.lane.b32.xlu1 %v802_v3, %s1477_s15  ;;  %964 = vrot.lane.b32.xlu0 %v775_v63, %s1478_s30  ;;  %v806_v3 = vmul.f32 %v752_v24, %v1948_v57  ;;  %v779_v9 = vmul.f32 %v725_v48, %v1959_v62  ;;  %v726_v62 = vld [vmem:[%s2296_s2 + $0xb8] sm:$0xff] }
 0x194   :  { %v780_v20 = vmul.f32 %v726_v62, %v1966_v7 }
 0x195   :  { %v1034_v22 = vpop.permute.xlu1 %1033  ;;  %v826_v25 = vpop.permute.xlu0 %825 }
 0x196   :  { %v1051_v26 = vsel %vm1049_vm2, %v1016_v29, %v1034_v22 }
 0x197   :  { %v2084_v27 = vadd.f32 %v1051_v26, %v782_v14  ;;  %982 = vrot.lane.b32.xlu0 %v775_v63, %s1479_s1  ;;  %966 = vrot.lane.b32.xlu1 %v776_v1, %s1478_s30  ;;  %v731_v63 = vld [vmem:[%s2296_s2 + $0xe0] sm:$0xff]  ;;  %v786_v14 = vmul.f32 %v732_v18, %v1795_v59  ;;  %v754_v59 = vld [vmem:[%s2296_s2 + $0x198] sm:$0xff] }
 0x198   :  { %v785_v57 = vmul.f32 %v731_v63, %v1793_v54  ;;  %v753_v54 = vld [vmem:[%s2296_s2 + $0x190] sm:$0xff]  ;;  %v808_v36 = vmul.f32 %v754_v59, %v1968_v8  ;;  %v756_v8 = vld [vmem:[%s2296_s2 + $0x1a8] sm:$0xff] }
 0x199   :  { %v844_v21 = vpop.permute.xlu0 %843  ;;  %v828_v32 = vpop.permute.xlu1 %827 }
 0x19a   :  { %v2093_v40 = vsel %vm853_vm1, %v826_v25, %v844_v21 }
 0x19b   :  { %1119 = vrot.lane.b32.xlu0 %v803_v31, %s1476_s12  ;;  %984 = vrot.lane.b32.xlu1 %v776_v1, %s1479_s1 }
 0x19d   :  { %v1018_v37 = vpop.permute.xlu0 %1017  ;;  %v846_v38 = vpop.permute.xlu1 %845 }
 0x19e   :  { %v2105_v39 = vsel %vm853_vm1, %v828_v32, %v846_v38 }
 0x19f   :  { %1137 = vrot.lane.b32.xlu0 %v803_v31, %s1477_s15  ;;  %1121 = vrot.lane.b32.xlu1 %v804_v11, %s1476_s12  ;;  %v807_v31 = vmul.f32 %v753_v54, %v1961_v2  ;;  %v755_v2 = vld [vmem:[%s2296_s2 + $0x1a0] sm:$0xff] }
 0x1a1   :  { %v1036_v43 = vpop.permute.xlu0 %1035  ;;  %v1020_v44 = vpop.permute.xlu1 %1019 }
 0x1a2   :  { %v1052_v46 = vsel %vm1049_vm2, %v1018_v37, %v1036_v43 }
 0x1a3   :  { %v2118_v17 = vadd.f32 %v1052_v46, %v783_v12  ;;  %1139 = vrot.lane.b32.xlu1 %v804_v11, %s1477_s15  ;;  %968 = vrot.lane.b32.xlu0 %v777_v16, %s1478_s30 }
 0x1a5   :  { %v1038_v49 = vpop.permute.xlu1 %1037  ;;  %v867_v51 = vpop.permute.xlu0 %866 }
 0x1a6   :  { %v1053_v50 = vsel %vm1049_vm2, %v1020_v44, %v1038_v49 }
 0x1a7   :  { %v2128_v55 = vadd.f32 %v1053_v50, %v784_v47  ;;  %986 = vrot.lane.b32.xlu0 %v777_v16, %s1479_s1  ;;  %970 = vrot.lane.b32.xlu1 %v778_v23, %s1478_s30 }
 0x1a9   :  { %v885_v33 = vpop.permute.xlu0 %884  ;;  %v869_v60 = vpop.permute.xlu1 %868 }
 0x1aa   :  { %v903_v53 = vsel %vm902_vm3, %v867_v51, %v885_v33 }
 0x1ab   :  { %v2138_v28 = vadd.f32 %v903_v53, %v2028_v45  ;;  %1160 = vrot.lane.b32.xlu0 %v805_v58, %s1480_s19  ;;  %988 = vrot.lane.b32.xlu1 %v778_v23, %s1479_s1 }
 0x1ad   :  { %v1022_v0 = vpop.permute.xlu0 %1021  ;;  %v887_v6 = vpop.permute.xlu1 %886 }
 0x1ae   :  { %v904_v45 = vsel %vm902_vm3, %v869_v60, %v887_v6 }
 0x1af   :  { %v2152_v10 = vadd.f32 %v904_v45, %v2040_v52  ;;  %1178 = vrot.lane.b32.xlu0 %v805_v58, %s1481_s24  ;;  %1162 = vrot.lane.b32.xlu1 %v806_v3, %s1480_s19 }
 0x1b1   :  { %v1040_v13 = vpop.permute.xlu0 %1039  ;;  %v1024_v29 = vpop.permute.xlu1 %1023 }
 0x1b2   :  { %v1054_v52 = vsel %vm1049_vm2, %v1022_v0, %v1040_v13 }
 0x1b3   :  { %v2164_v19 = vadd.f32 %v1054_v52, %v785_v57  ;;  %1180 = vrot.lane.b32.xlu1 %v806_v3, %s1481_s24  ;;  %972 = vrot.lane.b32.xlu0 %v779_v9, %s1478_s30 }
 0x1b5   :  { %v1042_v1 = vpop.permute.xlu1 %1041  ;;  %v871_v22 = vpop.permute.xlu0 %870 }
 0x1b6   :  { %v1055_v25 = vsel %vm1049_vm2, %v1024_v29, %v1042_v1 }
 0x1b7   :  { %v2174_v26 = vadd.f32 %v1055_v25, %v786_v14  ;;  %990 = vrot.lane.b32.xlu0 %v779_v9, %s1479_s1  ;;  %974 = vrot.lane.b32.xlu1 %v780_v20, %s1478_s30 }
 0x1b9   :  { %v889_v21 = vpop.permute.xlu0 %888  ;;  %v873_v32 = vpop.permute.xlu1 %872 }
 0x1ba   :  { %v905_v7 = vsel %vm902_vm3, %v871_v22, %v889_v21 }
 0x1bb   :  { %v2184_v5 = vadd.f32 %v905_v7, %v2049_v61  ;;  %1164 = vrot.lane.b32.xlu0 %v807_v31, %s1480_s19  ;;  %992 = vrot.lane.b32.xlu1 %v780_v20, %s1479_s1  ;;  %v809_v61 = vmul.f32 %v755_v2, %v1981_v15 }
 0x1bd   :  { %v1063_v34 = vpop.permute.xlu0 %1062  ;;  %v891_v11 = vpop.permute.xlu1 %890 }
 0x1be   :  { %v906_v37 = vsel %vm902_vm3, %v873_v32, %v891_v11 }
 0x1bf   :  { %v2194_v38 = vadd.f32 %v906_v37, %v2061_v56  ;;  %1182 = vrot.lane.b32.xlu0 %v807_v31, %s1481_s24  ;;  %1166 = vrot.lane.b32.xlu1 %v808_v36, %s1480_s19  ;;  %v810_v56 = vmul.f32 %v756_v8, %v1988_v4 }
 0x1c1   :  { %v1081_v16 = vpop.permute.xlu0 %1080  ;;  %v1065_v12 = vpop.permute.xlu1 %1064 }
 0x1c2   :  { %v1099_v42 = vsel %vm1098_vm4, %v1063_v34, %v1081_v16 }
 0x1c3   :  { %1168 = vrot.lane.b32.xlu0 %v809_v61, %s1480_s19  ;;  %1184 = vrot.lane.b32.xlu1 %v808_v36, %s1481_s24 }
 0x1c5   :  { %v1083_v15 = vpop.permute.xlu1 %1082  ;;  %v875_v43 = vpop.permute.xlu0 %874 }
 0x1c6   :  { %v1100_v44 = vsel %vm1098_vm4, %v1065_v12, %v1083_v15 }
 0x1c7   :  { %1186 = vrot.lane.b32.xlu0 %v809_v61, %s1481_s24  ;;  %1170 = vrot.lane.b32.xlu1 %v810_v56, %s1480_s19 }
 0x1c9   :  { %v893_v41 = vpop.permute.xlu0 %892  ;;  %v877_v46 = vpop.permute.xlu1 %876 }
 0x1ca   :  { %v907_v47 = vsel %vm902_vm3, %v875_v43, %v893_v41 }
 0x1cb   :  { %v2211_v30 = vadd.f32 %v907_v47, %v2093_v40  ;;  %1188 = vrot.lane.b32.xlu1 %v810_v56, %s1481_s24 }
 0x1cd   :  { %v1067_v23 = vpop.permute.xlu0 %1066  ;;  %v895_v49 = vpop.permute.xlu1 %894 }
 0x1ce   :  { %v908_v4 = vsel %vm902_vm3, %v877_v46, %v895_v49 }
 0x1cf   :  { %v2216_v51 = vadd.f32 %v908_v4, %v2105_v39 }
 0x1d1   :  { %v1085_v50 = vpop.permute.xlu0 %1084  ;;  %v1069_v58 = vpop.permute.xlu1 %1068 }
 0x1d2   :  { %v1101_v33 = vsel %vm1098_vm4, %v1067_v23, %v1085_v50 }
 0x1d5   :  { %v1087_v60 = vpop.permute.xlu1 %1086  ;;  %v916_v24 = vpop.permute.xlu0 %915 }
 0x1d6   :  { %v1102_v53 = vsel %vm1098_vm4, %v1069_v58, %v1087_v60 }
 0x1d9   :  { %v934_v40 = vpop.permute.xlu0 %933  ;;  %v918_v48 = vpop.permute.xlu1 %917 }
 0x1da   :  { %v952_v3 = vsel %vm951_vm5, %v916_v24, %v934_v40 }
 0x1dd   :  { %v1071_v0 = vpop.permute.xlu0 %1070  ;;  %v936_v6 = vpop.permute.xlu1 %935 }
 0x1de   :  { %v953_v63 = vsel %vm951_vm5, %v918_v48, %v936_v6 }
 0x1e1   :  { %v1089_v45 = vpop.permute.xlu0 %1088  ;;  %v1073_v39 = vpop.permute.xlu1 %1072 }
 0x1e2   :  { %v1103_v9 = vsel %vm1098_vm4, %v1071_v0, %v1089_v45 }
 0x1e5   :  { %v1091_v57 = vpop.permute.xlu1 %1090  ;;  %v920_v13 = vpop.permute.xlu0 %919 }
 0x1e6   :  { %v1104_v29 = vsel %vm1098_vm4, %v1073_v39, %v1091_v57 }
 0x1e9   :  { %v938_v18 = vpop.permute.xlu0 %937  ;;  %v922_v62 = vpop.permute.xlu1 %921 }
 0x1ea   :  { %v954_v52 = vsel %vm951_vm5, %v920_v13, %v938_v18 }
 0x1ed   :  { %v1112_v54 = vpop.permute.xlu0 %1111  ;;  %v940_v14 = vpop.permute.xlu1 %939 }
 0x1ee   :  { %v955_v20 = vsel %vm951_vm5, %v922_v62, %v940_v14 }
 0x1f1   :  { %v1130_v1 = vpop.permute.xlu0 %1129  ;;  %v1114_v22 = vpop.permute.xlu1 %1113 }
 0x1f2   :  { %v1148_v25 = vsel %vm1147_vm6, %v1112_v54, %v1130_v1 }
 0x1f3   :  { %v1221_v31 = vadd.f32 %v1148_v25, %v1099_v42 }
 0x1f5   :  { %v1233_v21 = vadd.f32 %v1221_v31, %v2074_v35  ;;  %v1132_v32 = vpop.permute.xlu1 %1131  ;;  %v2228_v59 = vpop.permute.xlu0 %923 }
 0x1f6   :  { %v1149_v7 = vsel %vm1147_vm6, %v1114_v22, %v1132_v32 }
 0x1f7   :  { %v1222_v2 = vadd.f32 %v1149_v7, %v1100_v44 }
 0x1f9   :  { %v1234_v36 = vadd.f32 %v1222_v2, %v2084_v27  ;;  %v2232_v34 = vpop.permute.xlu0 %941  ;;  %v2234_v11 = vpop.permute.xlu1 %925 }
 0x1fa   :  { %v956_v7 = vsel %vm951_vm5, %v2228_v59, %v2232_v34 }
 0x1fd   :  { %v1116_v37 = vpop.permute.xlu0 %1115  ;;  %v2236_v61 = vpop.permute.xlu1 %943 }
 0x201   :  { %v1134_v16 = vpop.permute.xlu0 %1133  ;;  %v1118_v12 = vpop.permute.xlu1 %1117 }
 0x202   :  { %v1150_v8 = vsel %vm1147_vm6, %v1116_v37, %v1134_v16 }
 0x203   :  { %v1223_v35 = vadd.f32 %v1150_v8, %v1101_v33  ;;  %v957_v8 = vsel %vm951_vm5, %v2234_v11, %v2236_v61 }
 0x205   :  { %v1235_v42 = vadd.f32 %v1223_v35, %v2118_v17  ;;  %v1136_v56 = vpop.permute.xlu1 %1135  ;;  %v965_v15 = vpop.permute.xlu0 %964 }
 0x206   :  { %v1151_v43 = vsel %vm1147_vm6, %v1118_v12, %v1136_v56 }
 0x207   :  { %v1224_v44 = vadd.f32 %v1151_v43, %v1102_v53 }
 0x209   :  { %v1236_v27 = vadd.f32 %v1224_v44, %v2128_v55  ;;  %v983_v41 = vpop.permute.xlu0 %982  ;;  %v967_v46 = vpop.permute.xlu1 %966 }
 0x20a   :  { %v1001_v47 = vsel %vm1000_vm7, %v965_v15, %v983_v41 }
 0x20b   :  { %v1209_v23 = vadd.f32 %v1001_v47, %v952_v3 }
 0x20d   :  { %v1227_v49 = vadd.f32 %v1209_v23, %v2138_v28  ;;  %v1120_v4 = vpop.permute.xlu0 %1119  ;;  %v985_v50 = vpop.permute.xlu1 %984 }
 0x20e   :  { %v1002_v58 = vsel %vm1000_vm7, %v967_v46, %v985_v50 }
 0x20f   :  { %v1210_v17 = vadd.f32 %v1002_v58, %v953_v63  ;;  %v1239_v33 = vadd.f32 %v1233_v21, %v1227_v49 }
 0x211   :  { %v1228_v60 = vadd.f32 %v1210_v17, %v2152_v10  ;;  %v1138_v24 = vpop.permute.xlu0 %1137  ;;  %v1122_v53 = vpop.permute.xlu1 %1121 }
 0x212   :  { %v1152_v40 = vsel %vm1147_vm6, %v1120_v4, %v1138_v24 }
 0x213   :  { %v1225_v55 = vadd.f32 %v1152_v40, %v1103_v9  ;;  %v1240_v48 = vadd.f32 %v1234_v36, %v1228_v60 }
 0x215   :  { %v1237_v0 = vadd.f32 %v1225_v55, %v2164_v19  ;;  %v1140_v6 = vpop.permute.xlu1 %1139  ;;  %v969_v3 = vpop.permute.xlu0 %968 }
 0x216   :  { %v1153_v28 = vsel %vm1147_vm6, %v1122_v53, %v1140_v6 }
 0x217   :  { %v1226_v45 = vadd.f32 %v1153_v28, %v1104_v29 }
 0x219   :  { %v1238_v39 = vadd.f32 %v1226_v45, %v2174_v26  ;;  %v987_v57 = vpop.permute.xlu0 %986  ;;  %v971_v63 = vpop.permute.xlu1 %970 }
 0x21a   :  { %v1003_v13 = vsel %vm1000_vm7, %v969_v3, %v987_v57 }
 0x21b   :  { %v1211_v10 = vadd.f32 %v1003_v13, %v954_v52 }
 0x21d   :  { %v1229_v18 = vadd.f32 %v1211_v10, %v2184_v5  ;;  %v1161_v62 = vpop.permute.xlu0 %1160  ;;  %v989_v54 = vpop.permute.xlu1 %988 }
 0x21e   :  { %v1004_v9 = vsel %vm1000_vm7, %v971_v63, %v989_v54 }
 0x21f   :  { %v1212_v14 = vadd.f32 %v1004_v9, %v955_v20  ;;  %v1241_v19 = vadd.f32 %v1235_v42, %v1229_v18 }
 0x221   :  { %v1230_v1 = vadd.f32 %v1212_v14, %v2194_v38  ;;  %v1179_v22 = vpop.permute.xlu0 %1178  ;;  %v1163_v29 = vpop.permute.xlu1 %1162 }
 0x222   :  { %v1197_v26 = vsel %vm1196_vm8, %v1161_v62, %v1179_v22 }
 0x223   :  { %v1245_v25 = vadd.f32 %v1239_v33, %v1197_v26  ;;  %v1242_v31 = vadd.f32 %v1236_v27, %v1230_v1 }
 0x225   :  { %1252 = vst.msk [vmem:[%s2297_s3] sm:$0xff] %vm1251_vm9, %v1245_v25  ;;  %v1181_v5 = vpop.permute.xlu1 %1180  ;;  %v973_v52 = vpop.permute.xlu0 %972 }
 0x226   :  { %v1198_v20 = vsel %vm1196_vm8, %v1163_v29, %v1181_v5 }
 0x227   :  { %v1246_v21 = vadd.f32 %v1240_v48, %v1198_v20 }
 0x229   :  { %1253 = vst.msk [vmem:[%s2297_s3 + $0x8] sm:$0xff] %vm1251_vm9, %v1246_v21  ;;  %v991_v38 = vpop.permute.xlu0 %990  ;;  %v975_v32 = vpop.permute.xlu1 %974 }
 0x22a   :  { %v1005_v2 = vsel %vm1000_vm7, %v973_v52, %v991_v38 }
 0x22b   :  { %v1213_v36 = vadd.f32 %v1005_v2, %v956_v7 }
 0x22d   :  { %v1231_v37 = vadd.f32 %v1213_v36, %v2211_v30  ;;  %v1165_v16 = vpop.permute.xlu0 %1164  ;;  %v993_v12 = vpop.permute.xlu1 %992 }
 0x22e   :  { %v1006_v35 = vsel %vm1000_vm7, %v975_v32, %v993_v12 }
 0x22f   :  { %v1214_v42 = vadd.f32 %v1006_v35, %v957_v8  ;;  %v1243_v56 = vadd.f32 %v1237_v0, %v1231_v37 }
 0x231   :  { %v1232_v15 = vadd.f32 %v1214_v42, %v2216_v51  ;;  %v1183_v43 = vpop.permute.xlu0 %1182  ;;  %v1167_v44 = vpop.permute.xlu1 %1166 }
 0x232   :  { %v1199_v59 = vsel %vm1196_vm8, %v1165_v16, %v1183_v43 }
 0x233   :  { %v1247_v34 = vadd.f32 %v1241_v19, %v1199_v59  ;;  %v1244_v27 = vadd.f32 %v1238_v39, %v1232_v15 }
 0x235   :  { %1254 = vst.msk [vmem:[%s2297_s3 + $0x10] sm:$0xff] %vm1251_vm9, %v1247_v34  ;;  %v1169_v30 = vpop.permute.xlu0 %1168  ;;  %v1185_v41 = vpop.permute.xlu1 %1184 }
 0x236   :  { %v1200_v11 = vsel %vm1196_vm8, %v1167_v44, %v1185_v41 }
 0x237   :  { %v1248_v61 = vadd.f32 %v1242_v31, %v1200_v11 }
 0x239   :  { %1255 = vst.msk [vmem:[%s2297_s3 + $0x18] sm:$0xff] %vm1251_vm9, %v1248_v61  ;;  %v1187_v51 = vpop.permute.xlu0 %1186  ;;  %v1171_v46 = vpop.permute.xlu1 %1170 }
 0x23a   :  { %v1201_v47 = vsel %vm1196_vm8, %v1169_v30, %v1187_v51 }
 0x23b   :  { %v1249_v23 = vadd.f32 %v1243_v56, %v1201_v47 }
 0x23d   :  { %1256 = vst.msk [vmem:[%s2297_s3 + $0x20] sm:$0xff] %vm1251_vm9, %v1249_v23  ;;  %v1189_v49 = vpop.permute.xlu1 %1188 }
 0x23e   :  { %v1202_v4 = vsel %vm1196_vm8, %v1171_v46, %v1189_v49 }
 0x23f   :  { %v1250_v50 = vadd.f32 %v1244_v27, %v1202_v4 }
 0x241   :  { %1257 = vst.msk [vmem:[%s2297_s3 + $0x28] sm:$0xff] %vm1251_vm9, %v1250_v50 }

</bundles_post_ra>
